<compile_context>
chip_gen: v7x
topology: tpu7x:2x2x1
jax: 0.10.0
libtpu: 0.0.40
codegen_flags: <defaults>
</compile_context>

<pallas_src>
import functools

import jax
import jax.numpy as jnp
from jax import lax
from jax.experimental import pallas as pl
from jax.experimental.pallas import tpu as pltpu


def _flash_causal_kernel(xq_ref, xkv_ref, wqkv_ref, o_ref,
                         q_sc, acc_sc, m_sc, l_sc,
                         *, d_out, blk_q, blk_k, scale):
    qi = pl.program_id(1)
    ki = pl.program_id(2)

    q_start = qi * blk_q
    q_end = q_start + (blk_q - 1)
    kv_start = ki * blk_k
    kv_end = kv_start + (blk_k - 1)

    # ---- init at first kv step: reset accumulators, project (and scale) Q once ----
    @pl.when(ki == 0)
    def _init():
        m_sc[...] = jnp.full(m_sc.shape, -jnp.inf, m_sc.dtype)
        l_sc[...] = jnp.zeros(l_sc.shape, l_sc.dtype)
        acc_sc[...] = jnp.zeros(acc_sc.shape, acc_sc.dtype)
        xq = xq_ref[0]                                        # (blk_q, d_in) bf16
        q = jnp.dot(xq, wqkv_ref[:, :d_out],
                    preferred_element_type=jnp.float32)       # (blk_q, d_out) f32
        # fold 1/sqrt(d_out) into Q (cheaper than scaling the (T,T) scores)
        q_sc[...] = (q * scale).astype(q_sc.dtype)

    # ---- one online-softmax update for the current kv tile ----
    def _accumulate(apply_mask):
        xkv = xkv_ref[0]                                      # (blk_k, d_in) bf16
        # fused K/V projection: one matmul, 2*d_out output lanes
        kv = jnp.dot(xkv, wqkv_ref[:, d_out:],
                     preferred_element_type=jnp.float32)      # (blk_k, 2*d_out) f32
        k = kv[:, :d_out].astype(jnp.bfloat16)
        v = kv[:, d_out:].astype(jnp.bfloat16)

        # scores: contract last dims directly (no explicit K transpose)
        s = lax.dot_general(q_sc[...], k, (((1,), (1,)), ((), ())),
                            preferred_element_type=jnp.float32)   # (blk_q, blk_k)

        if apply_mask:  # only on diagonal-straddling blocks
            row = q_start + lax.broadcasted_iota(jnp.int32, s.shape, 0)
            col = kv_start + lax.broadcasted_iota(jnp.int32, s.shape, 1)
            s = jnp.where(col > row, -jnp.inf, s)

        m_prev = m_sc[...]
        m_new = jnp.maximum(m_prev, jnp.max(s, axis=-1, keepdims=True))
        alpha = jnp.exp(m_prev - m_new)
        p = jnp.exp(s - m_new)
        l_sc[...] = alpha * l_sc[...] + jnp.sum(p, axis=-1, keepdims=True)
        acc_sc[...] = alpha * acc_sc[...] + jnp.dot(
            p.astype(jnp.bfloat16), v, preferred_element_type=jnp.float32)
        m_sc[...] = m_new

    # fully visible block (all cols <= all rows): no mask work at all
    @pl.when(kv_end <= q_start)
    def _full_block():
        _accumulate(apply_mask=False)

    # block straddling the diagonal: apply the causal mask
    @pl.when(jnp.logical_and(kv_start <= q_end, kv_end > q_start))
    def _diag_block():
        _accumulate(apply_mask=True)

    # fully-masked blocks (kv_start > q_end) are skipped entirely.

    # ---- finalize at last kv step: normalize and store ----
    @pl.when(ki == pl.num_programs(2) - 1)
    def _finalize():
        inv_l = pl.reciprocal(l_sc[...], approx=True)
        o_ref[0] = (acc_sc[...] * inv_l).astype(o_ref.dtype)


def causal_attention(x, w_query, w_key, w_value, *, blk_q=None, blk_k=None):
    """x: (B, T, d_in) f32; w_*: (d_in, d_out) f32 (pre-transposed nn.Linear weights)."""
    B, T, d_in = x.shape
    d_out = w_query.shape[1]

    # Default tiles: 128-aligned (good for v5e's 128x128 MXUs; bump to 256 on
    # v6e/v7x and re-derive the VMEM budget for v7x's 64 MiB if T is large).
    blk_q = min(T, 128) if blk_q is None else blk_q
    blk_k = min(T, 128) if blk_k is None else blk_k
    assert T % blk_q == 0 and T % blk_k == 0, "T must be divisible by the tile sizes"

    # Fuse the three projection weights: one DMA, wide MXU operand.
    w_qkv = jnp.concatenate([w_query, w_key, w_value], axis=1).astype(jnp.bfloat16)
    x_bf = x.astype(jnp.bfloat16)   # bf16 MXU inputs, halves HBM->VMEM traffic

    kernel = functools.partial(
        _flash_causal_kernel,
        d_out=d_out, blk_q=blk_q, blk_k=blk_k, scale=float(d_out) ** -0.5)

    grid = (B, T // blk_q, T // blk_k)
    return pl.pallas_call(
        kernel,
        out_shape=jax.ShapeDtypeStruct((B, T, d_out), x.dtype),
        grid_spec=pltpu.PrefetchScalarGridSpec(
            num_scalar_prefetch=0,
            grid=grid,
            in_specs=[
                # q-side x tile (constant across the kv axis)
                pl.BlockSpec((1, blk_q, d_in), lambda b, qi, ki: (b, qi, 0)),
                # kv-side x tile
                pl.BlockSpec((1, blk_k, d_in), lambda b, qi, ki: (b, ki, 0)),
                # fused QKV weight, resident (constant block index -> no re-DMA)
                pl.BlockSpec((d_in, 3 * d_out), lambda b, qi, ki: (0, 0)),
            ],
            out_specs=pl.BlockSpec((1, blk_q, d_out), lambda b, qi, ki: (b, qi, 0)),
            scratch_shapes=[
                pltpu.VMEM((blk_q, d_out), jnp.bfloat16),   # cached scaled Q tile
                pltpu.VMEM((blk_q, d_out), jnp.float32),    # output accumulator
                pltpu.VMEM((blk_q, 1), jnp.float32),        # running max m
                pltpu.VMEM((blk_q, 1), jnp.float32),        # running sum l
            ],
        ),
        compiler_params=pltpu.CompilerParams(
            dimension_semantics=("parallel", "parallel", "arbitrary")),
    )(x_bf, x_bf, w_qkv)


def _reference(x, wq, wk, wv):
    # Pure-JAX f32 reference reproducing the PyTorch forward (eval mode).
    q = x @ wq
    k = x @ wk
    v = x @ wv
    s = jnp.einsum("btd,bsd->bts", q, k)
    T = x.shape[1]
    mask = jnp.triu(jnp.ones((T, T), dtype=bool), k=1)
    s = jnp.where(mask[None, :, :], -jnp.inf, s)
    w = jax.nn.softmax(s / jnp.sqrt(jnp.float32(k.shape[-1])), axis=-1)
    return w @ v


if __name__ == "__main__":
    # Module config: d_in=32, d_out=32, context_length=8, dropout=0.1, qkv_bias=False
    B, T, d_in, d_out = 2, 8, 32, 32

    key = jax.random.PRNGKey(0)
    kx, kq, kk, kv = jax.random.split(key, 4)
    x = jax.random.normal(kx, (B, T, d_in), dtype=jnp.float32)
    # Deterministic "weights" (stored as (d_in, d_out) == torch weight.T)
    w_query = 0.02 * jax.random.normal(kq, (d_in, d_out), dtype=jnp.float32)
    w_key = 0.02 * jax.random.normal(kk, (d_in, d_out), dtype=jnp.float32)
    w_value = 0.02 * jax.random.normal(kv, (d_in, d_out), dtype=jnp.float32)

    out = causal_attention(x, w_query, w_key, w_value)
    jax.block_until_ready(out)

    ref = _reference(x, w_query, w_key, w_value)
    assert out.shape == (B, T, d_out)
    max_err = jnp.max(jnp.abs(out - ref))
    # bf16 MXU inputs + approx reciprocal -> compare at bf16-appropriate tolerance
    assert jnp.allclose(out, ref, atol=1e-2, rtol=1e-2), f"mismatch vs reference (max abs err {max_err})"

    print("KERNEL_OK")
</pallas_src>

<mosaic_0001>
module attributes {stable_mosaic.version = 11 : i64} {
  func.func @_flash_causal_kernel(%arg0: i32, %arg1: i32, %arg2: i32, %arg3: memref<1x8x32xbf16, #tpu.memory_space<vmem>>, %arg4: memref<1x8x32xbf16, #tpu.memory_space<vmem>>, %arg5: memref<32x96xbf16, #tpu.memory_space<vmem>>, %arg6: memref<1x8x32xf32, #tpu.memory_space<vmem>>, %arg7: memref<8x32xbf16, #tpu.memory_space<vmem>>, %arg8: memref<8x32xf32, #tpu.memory_space<vmem>>, %arg9: memref<8x1xf32, #tpu.memory_space<vmem>>, %arg10: memref<8x1xf32, #tpu.memory_space<vmem>>) attributes {dimension_semantics = [#tpu.dimension_semantics<parallel>, #tpu.dimension_semantics<parallel>, #tpu.dimension_semantics<arbitrary>], iteration_bounds = array<i64: 2, 1, 1>, scalar_prefetch = 0 : i64, scratch_operands = 4 : i64, tpu.core_type = #tpu.core_type<tc>, window_params = [{transform_indices = @transform_0, window_bounds = array<i64: 1, 8, 32>}, {transform_indices = @transform_1, window_bounds = array<i64: 1, 8, 32>}, {pipeline_mode = #tpu.pipeline_mode<synchronous>, transform_indices = @transform_2, window_bounds = array<i64: 32, 96>}, {transform_indices = @transform_3, window_bounds = array<i64: 1, 8, 32>}]} {
    %c8_i32 = arith.constant 8 : i32
    %0 = arith.muli %arg1, %c8_i32 : i32
    %c7_i32 = arith.constant 7 : i32
    %1 = arith.addi %0, %c7_i32 : i32
    %c8_i32_0 = arith.constant 8 : i32
    %2 = arith.muli %arg2, %c8_i32_0 : i32
    %c7_i32_1 = arith.constant 7 : i32
    %3 = arith.addi %2, %c7_i32_1 : i32
    %c0_i32 = arith.constant 0 : i32
    %4 = arith.cmpi eq, %arg2, %c0_i32 : i32
    %5 = arith.extui %4 : i1 to i32
    %c0_i32_2 = arith.constant 0 : i32
    %6 = arith.cmpi ne, %5, %c0_i32_2 : i32
    scf.if %6 {
      %cst = arith.constant 0xFF800000 : f32
      %18 = vector.broadcast %cst : f32 to vector<8x1xf32>
      %c0 = arith.constant 0 : index
      %c0_7 = arith.constant 0 : index
      %19 = vector.load %arg9[%c0, %c0_7] : memref<8x1xf32, #tpu.memory_space<vmem>>, vector<8x1xf32>
      tpu.vector_store %arg9[%c0, %c0_7], %18 {strides = array<i32>} : memref<8x1xf32, #tpu.memory_space<vmem>>, vector<8x1xf32>,
      %cst_8 = arith.constant 0.000000e+00 : f32
      %20 = vector.broadcast %cst_8 : f32 to vector<8x1xf32>
      %c0_9 = arith.constant 0 : index
      %c0_10 = arith.constant 0 : index
      %21 = vector.load %arg10[%c0_9, %c0_10] : memref<8x1xf32, #tpu.memory_space<vmem>>, vector<8x1xf32>
      tpu.vector_store %arg10[%c0_9, %c0_10], %20 {strides = array<i32>} : memref<8x1xf32, #tpu.memory_space<vmem>>, vector<8x1xf32>,
      %cst_11 = arith.constant 0.000000e+00 : f32
      %22 = vector.broadcast %cst_11 : f32 to vector<8x32xf32>
      %c0_12 = arith.constant 0 : index
      %c0_13 = arith.constant 0 : index
      %23 = vector.load %arg8[%c0_12, %c0_13] : memref<8x32xf32, #tpu.memory_space<vmem>>, vector<8x32xf32>
      tpu.vector_store %arg8[%c0_12, %c0_13], %22 {strides = array<i32>} : memref<8x32xf32, #tpu.memory_space<vmem>>, vector<8x32xf32>,
      %c0_14 = arith.constant 0 : index
      %c0_15 = arith.constant 0 : index
      %c0_16 = arith.constant 0 : index
      %24 = vector.load %arg3[%c0_14, %c0_15, %c0_16] : memref<1x8x32xbf16, #tpu.memory_space<vmem>>, vector<1x8x32xbf16>
      %25 = vector.shape_cast %24 : vector<1x8x32xbf16> to vector<8x32xbf16>
      %c0_17 = arith.constant 0 : index
      %c0_18 = arith.constant 0 : index
      %26 = vector.load %arg5[%c0_17, %c0_18] : memref<32x96xbf16, #tpu.memory_space<vmem>>, vector<32x32xbf16>
      %cst_19 = arith.constant dense<0.000000e+00> : vector<8x32xf32>
      %27 = tpu.matmul %25, %26, %cst_19 {dimension_numbers = #tpu.dot_dimension_numbers<[1], [0], [0], [1], [0, 0, 1, 1], [], []>} : vector<8x32xbf16>, vector<32x32xbf16>, vector<8x32xf32> -> vector<8x32xf32>
      %cst_20 = arith.constant 0.176776692 : f32
      %28 = vector.broadcast %cst_20 : f32 to vector<8x32xf32>
      %29 = arith.mulf %27, %28 : vector<8x32xf32>
      %30 = arith.truncf %29 : vector<8x32xf32> to vector<8x32xbf16>
      %c0_21 = arith.constant 0 : index
      %c0_22 = arith.constant 0 : index
      %31 = vector.load %arg7[%c0_21, %c0_22] : memref<8x32xbf16, #tpu.memory_space<vmem>>, vector<8x32xbf16>
      tpu.vector_store %arg7[%c0_21, %c0_22], %30 {strides = array<i32>} : memref<8x32xbf16, #tpu.memory_space<vmem>>, vector<8x32xbf16>,
    } else {
    }
    %7 = arith.cmpi sle, %3, %0 : i32
    %8 = arith.extui %7 : i1 to i32
    %c0_i32_3 = arith.constant 0 : i32
    %9 = arith.cmpi ne, %8, %c0_i32_3 : i32
    scf.if %9 {
      %c0 = arith.constant 0 : index
      %c0_7 = arith.constant 0 : index
      %c0_8 = arith.constant 0 : index
      %18 = vector.load %arg4[%c0, %c0_7, %c0_8] : memref<1x8x32xbf16, #tpu.memory_space<vmem>>, vector<1x8x32xbf16>
      %19 = vector.shape_cast %18 : vector<1x8x32xbf16> to vector<8x32xbf16>
      %c0_9 = arith.constant 0 : index
      %c32 = arith.constant 32 : index
      %20 = vector.load %arg5[%c0_9, %c32] : memref<32x96xbf16, #tpu.memory_space<vmem>>, vector<32x64xbf16>
      %cst = arith.constant dense<0.000000e+00> : vector<8x64xf32>
      %21 = tpu.matmul %19, %20, %cst {dimension_numbers = #tpu.dot_dimension_numbers<[1], [0], [0], [1], [0, 0, 1, 1], [], []>} : vector<8x32xbf16>, vector<32x64xbf16>, vector<8x64xf32> -> vector<8x64xf32>
      %22 = vector.extract_strided_slice %21 {offsets = [0, 0], sizes = [8, 32], strides = [1, 1]} : vector<8x64xf32> to vector<8x32xf32>
      %23 = arith.truncf %22 : vector<8x32xf32> to vector<8x32xbf16>
      %24 = vector.extract_strided_slice %21 {offsets = [0, 32], sizes = [8, 32], strides = [1, 1]} : vector<8x64xf32> to vector<8x32xf32>
      %25 = arith.truncf %24 : vector<8x32xf32> to vector<8x32xbf16>
      %c0_10 = arith.constant 0 : index
      %c0_11 = arith.constant 0 : index
      %26 = vector.load %arg7[%c0_10, %c0_11] : memref<8x32xbf16, #tpu.memory_space<vmem>>, vector<8x32xbf16>
      %cst_12 = arith.constant dense<0.000000e+00> : vector<8x8xf32>
      %27 = tpu.matmul %26, %23, %cst_12 {dimension_numbers = #tpu.dot_dimension_numbers<[1], [1], [0], [0], [0, 0, 1, 0], [], []>} : vector<8x32xbf16>, vector<8x32xbf16>, vector<8x8xf32> -> vector<8x8xf32>
      %c0_13 = arith.constant 0 : index
      %c0_14 = arith.constant 0 : index
      %28 = vector.load %arg9[%c0_13, %c0_14] : memref<8x1xf32, #tpu.memory_space<vmem>>, vector<8x1xf32>
      %cst_15 = arith.constant dense<0xFF800000> : vector<8xf32>
      %29 = vector.multi_reduction <maximumf>, %27, %cst_15 [1] : vector<8x8xf32> to vector<8xf32>
      %30 = vector.shape_cast %29 : vector<8xf32> to vector<8x1xf32>
      %31 = arith.maximumf %28, %30 : vector<8x1xf32>
      %32 = arith.subf %28, %31 : vector<8x1xf32>
      %33 = math.exp %32 : vector<8x1xf32>
      %34 = vector.broadcast %31 : vector<8x1xf32> to vector<8x8xf32>
      %35 = arith.subf %27, %34 : vector<8x8xf32>
      %36 = math.exp %35 : vector<8x8xf32>
      %c0_16 = arith.constant 0 : index
      %c0_17 = arith.constant 0 : index
      %37 = vector.load %arg10[%c0_16, %c0_17] : memref<8x1xf32, #tpu.memory_space<vmem>>, vector<8x1xf32>
      %38 = arith.mulf %33, %37 : vector<8x1xf32>
      %cst_18 = arith.constant dense<0.000000e+00> : vector<8xf32>
      %39 = vector.multi_reduction <add>, %36, %cst_18 [1] : vector<8x8xf32> to vector<8xf32>
      %40 = vector.shape_cast %39 : vector<8xf32> to vector<8x1xf32>
      %41 = arith.addf %38, %40 : vector<8x1xf32>
      %c0_19 = arith.constant 0 : index
      %c0_20 = arith.constant 0 : index
      %42 = vector.load %arg10[%c0_19, %c0_20] : memref<8x1xf32, #tpu.memory_space<vmem>>, vector<8x1xf32>
      tpu.vector_store %arg10[%c0_19, %c0_20], %41 {strides = array<i32>} : memref<8x1xf32, #tpu.memory_space<vmem>>, vector<8x1xf32>,
      %c0_21 = arith.constant 0 : index
      %c0_22 = arith.constant 0 : index
      %43 = vector.load %arg8[%c0_21, %c0_22] : memref<8x32xf32, #tpu.memory_space<vmem>>, vector<8x32xf32>
      %44 = vector.broadcast %33 : vector<8x1xf32> to vector<8x32xf32>
      %45 = arith.mulf %44, %43 : vector<8x32xf32>
      %46 = arith.truncf %36 : vector<8x8xf32> to vector<8x8xbf16>
      %cst_23 = arith.constant dense<0.000000e+00> : vector<8x32xf32>
      %47 = tpu.matmul %46, %25, %cst_23 {dimension_numbers = #tpu.dot_dimension_numbers<[1], [0], [0], [1], [0, 0, 1, 1], [], []>} : vector<8x8xbf16>, vector<8x32xbf16>, vector<8x32xf32> -> vector<8x32xf32>
      %48 = arith.addf %45, %47 : vector<8x32xf32>
      %c0_24 = arith.constant 0 : index
      %c0_25 = arith.constant 0 : index
      %49 = vector.load %arg8[%c0_24, %c0_25] : memref<8x32xf32, #tpu.memory_space<vmem>>, vector<8x32xf32>
      tpu.vector_store %arg8[%c0_24, %c0_25], %48 {strides = array<i32>} : memref<8x32xf32, #tpu.memory_space<vmem>>, vector<8x32xf32>,
      %c0_26 = arith.constant 0 : index
      %c0_27 = arith.constant 0 : index
      %50 = vector.load %arg9[%c0_26, %c0_27] : memref<8x1xf32, #tpu.memory_space<vmem>>, vector<8x1xf32>
      tpu.vector_store %arg9[%c0_26, %c0_27], %31 {strides = array<i32>} : memref<8x1xf32, #tpu.memory_space<vmem>>, vector<8x1xf32>,
    } else {
    }
    %10 = arith.cmpi sle, %2, %1 : i32
    %11 = arith.cmpi sgt, %3, %0 : i32
    %12 = arith.andi %10, %11 : i1
    %13 = arith.extui %12 : i1 to i32
    %c0_i32_4 = arith.constant 0 : i32
    %14 = arith.cmpi ne, %13, %c0_i32_4 : i32
    scf.if %14 {
      %c0 = arith.constant 0 : index
      %c0_7 = arith.constant 0 : index
      %c0_8 = arith.constant 0 : index
      %18 = vector.load %arg4[%c0, %c0_7, %c0_8] : memref<1x8x32xbf16, #tpu.memory_space<vmem>>, vector<1x8x32xbf16>
      %19 = vector.shape_cast %18 : vector<1x8x32xbf16> to vector<8x32xbf16>
      %c0_9 = arith.constant 0 : index
      %c32 = arith.constant 32 : index
      %20 = vector.load %arg5[%c0_9, %c32] : memref<32x96xbf16, #tpu.memory_space<vmem>>, vector<32x64xbf16>
      %cst = arith.constant dense<0.000000e+00> : vector<8x64xf32>
      %21 = tpu.matmul %19, %20, %cst {dimension_numbers = #tpu.dot_dimension_numbers<[1], [0], [0], [1], [0, 0, 1, 1], [], []>} : vector<8x32xbf16>, vector<32x64xbf16>, vector<8x64xf32> -> vector<8x64xf32>
      %22 = vector.extract_strided_slice %21 {offsets = [0, 0], sizes = [8, 32], strides = [1, 1]} : vector<8x64xf32> to vector<8x32xf32>
      %23 = arith.truncf %22 : vector<8x32xf32> to vector<8x32xbf16>
      %24 = vector.extract_strided_slice %21 {offsets = [0, 32], sizes = [8, 32], strides = [1, 1]} : vector<8x64xf32> to vector<8x32xf32>
      %25 = arith.truncf %24 : vector<8x32xf32> to vector<8x32xbf16>
      %c0_10 = arith.constant 0 : index
      %c0_11 = arith.constant 0 : index
      %26 = vector.load %arg7[%c0_10, %c0_11] : memref<8x32xbf16, #tpu.memory_space<vmem>>, vector<8x32xbf16>
      %cst_12 = arith.constant dense<0.000000e+00> : vector<8x8xf32>
      %27 = tpu.matmul %26, %23, %cst_12 {dimension_numbers = #tpu.dot_dimension_numbers<[1], [1], [0], [0], [0, 0, 1, 0], [], []>} : vector<8x32xbf16>, vector<8x32xbf16>, vector<8x8xf32> -> vector<8x8xf32>
      %28 = tpu.iota {dimensions = array<i32: 0>} : vector<8x8xi32>
      %29 = vector.broadcast %0 : i32 to vector<8x8xi32>
      %30 = arith.addi %29, %28 : vector<8x8xi32>
      %31 = tpu.iota {dimensions = array<i32: 1>} : vector<8x8xi32>
      %32 = vector.broadcast %2 : i32 to vector<8x8xi32>
      %33 = arith.addi %32, %31 : vector<8x8xi32>
      %34 = arith.cmpi sgt, %33, %30 : vector<8x8xi32>
      %cst_13 = arith.constant 0xFF800000 : f32
      %35 = vector.broadcast %cst_13 : f32 to vector<8x8xf32>
      %36 = arith.select %34, %35, %27 : vector<8x8xi1>, vector<8x8xf32>
      %c0_14 = arith.constant 0 : index
      %c0_15 = arith.constant 0 : index
      %37 = vector.load %arg9[%c0_14, %c0_15] : memref<8x1xf32, #tpu.memory_space<vmem>>, vector<8x1xf32>
      %cst_16 = arith.constant dense<0xFF800000> : vector<8xf32>
      %38 = vector.multi_reduction <maximumf>, %36, %cst_16 [1] : vector<8x8xf32> to vector<8xf32>
      %39 = vector.shape_cast %38 : vector<8xf32> to vector<8x1xf32>
      %40 = arith.maximumf %37, %39 : vector<8x1xf32>
      %41 = arith.subf %37, %40 : vector<8x1xf32>
      %42 = math.exp %41 : vector<8x1xf32>
      %43 = vector.broadcast %40 : vector<8x1xf32> to vector<8x8xf32>
      %44 = arith.subf %36, %43 : vector<8x8xf32>
      %45 = math.exp %44 : vector<8x8xf32>
      %c0_17 = arith.constant 0 : index
      %c0_18 = arith.constant 0 : index
      %46 = vector.load %arg10[%c0_17, %c0_18] : memref<8x1xf32, #tpu.memory_space<vmem>>, vector<8x1xf32>
      %47 = arith.mulf %42, %46 : vector<8x1xf32>
      %cst_19 = arith.constant dense<0.000000e+00> : vector<8xf32>
      %48 = vector.multi_reduction <add>, %45, %cst_19 [1] : vector<8x8xf32> to vector<8xf32>
      %49 = vector.shape_cast %48 : vector<8xf32> to vector<8x1xf32>
      %50 = arith.addf %47, %49 : vector<8x1xf32>
      %c0_20 = arith.constant 0 : index
      %c0_21 = arith.constant 0 : index
      %51 = vector.load %arg10[%c0_20, %c0_21] : memref<8x1xf32, #tpu.memory_space<vmem>>, vector<8x1xf32>
      tpu.vector_store %arg10[%c0_20, %c0_21], %50 {strides = array<i32>} : memref<8x1xf32, #tpu.memory_space<vmem>>, vector<8x1xf32>,
      %c0_22 = arith.constant 0 : index
      %c0_23 = arith.constant 0 : index
      %52 = vector.load %arg8[%c0_22, %c0_23] : memref<8x32xf32, #tpu.memory_space<vmem>>, vector<8x32xf32>
      %53 = vector.broadcast %42 : vector<8x1xf32> to vector<8x32xf32>
      %54 = arith.mulf %53, %52 : vector<8x32xf32>
      %55 = arith.truncf %45 : vector<8x8xf32> to vector<8x8xbf16>
      %cst_24 = arith.constant dense<0.000000e+00> : vector<8x32xf32>
      %56 = tpu.matmul %55, %25, %cst_24 {dimension_numbers = #tpu.dot_dimension_numbers<[1], [0], [0], [1], [0, 0, 1, 1], [], []>} : vector<8x8xbf16>, vector<8x32xbf16>, vector<8x32xf32> -> vector<8x32xf32>
      %57 = arith.addf %54, %56 : vector<8x32xf32>
      %c0_25 = arith.constant 0 : index
      %c0_26 = arith.constant 0 : index
      %58 = vector.load %arg8[%c0_25, %c0_26] : memref<8x32xf32, #tpu.memory_space<vmem>>, vector<8x32xf32>
      tpu.vector_store %arg8[%c0_25, %c0_26], %57 {strides = array<i32>} : memref<8x32xf32, #tpu.memory_space<vmem>>, vector<8x32xf32>,
      %c0_27 = arith.constant 0 : index
      %c0_28 = arith.constant 0 : index
      %59 = vector.load %arg9[%c0_27, %c0_28] : memref<8x1xf32, #tpu.memory_space<vmem>>, vector<8x1xf32>
      tpu.vector_store %arg9[%c0_27, %c0_28], %40 {strides = array<i32>} : memref<8x1xf32, #tpu.memory_space<vmem>>, vector<8x1xf32>,
    } else {
    }
    %c0_i32_5 = arith.constant 0 : i32
    %15 = arith.cmpi eq, %arg2, %c0_i32_5 : i32
    %16 = arith.extui %15 : i1 to i32
    %c0_i32_6 = arith.constant 0 : i32
    %17 = arith.cmpi ne, %16, %c0_i32_6 : i32
    scf.if %17 {
      %c0 = arith.constant 0 : index
      %c0_7 = arith.constant 0 : index
      %18 = vector.load %arg10[%c0, %c0_7] : memref<8x1xf32, #tpu.memory_space<vmem>>, vector<8x1xf32>
      %19 = tpu.reciprocal %18 {approx = true} : vector<8x1xf32> -> vector<8x1xf32>
      %c0_8 = arith.constant 0 : index
      %c0_9 = arith.constant 0 : index
      %20 = vector.load %arg8[%c0_8, %c0_9] : memref<8x32xf32, #tpu.memory_space<vmem>>, vector<8x32xf32>
      %21 = vector.broadcast %19 : vector<8x1xf32> to vector<8x32xf32>
      %22 = arith.mulf %20, %21 : vector<8x32xf32>
      %c0_10 = arith.constant 0 : index
      %c0_11 = arith.constant 0 : index
      %c0_12 = arith.constant 0 : index
      %23 = vector.load %arg6[%c0_10, %c0_11, %c0_12] : memref<1x8x32xf32, #tpu.memory_space<vmem>>, vector<1x8x32xf32>
      %24 = vector.shape_cast %23 : vector<1x8x32xf32> to vector<8x32xf32>
      %25 = vector.shape_cast %22 : vector<8x32xf32> to vector<1x8x32xf32>
      tpu.vector_store %arg6[%c0_10, %c0_11, %c0_12], %25 {strides = array<i32>} : memref<1x8x32xf32, #tpu.memory_space<vmem>>, vector<1x8x32xf32>,
    } else {
    }
    return
  }
  func.func @transform_0(%arg0: i32, %arg1: i32, %arg2: i32) -> (i32, i32, i32) {
    %c0_i32 = arith.constant 0 : i32
    %c0_i32_0 = arith.constant 0 : i32
    return %arg0, %arg1, %c0_i32 : i32, i32, i32
  }
  func.func @transform_1(%arg0: i32, %arg1: i32, %arg2: i32) -> (i32, i32, i32) {
    %c0_i32 = arith.constant 0 : i32
    %c0_i32_0 = arith.constant 0 : i32
    return %arg0, %arg2, %c0_i32 : i32, i32, i32
  }
  func.func @transform_2(%arg0: i32, %arg1: i32, %arg2: i32) -> (i32, i32) {
    %c0_i32 = arith.constant 0 : i32
    %c0_i32_0 = arith.constant 0 : i32
    %c0_i32_1 = arith.constant 0 : i32
    return %c0_i32, %c0_i32_0 : i32, i32
  }
  func.func @transform_3(%arg0: i32, %arg1: i32, %arg2: i32) -> (i32, i32, i32) {
    %c0_i32 = arith.constant 0 : i32
    %c0_i32_0 = arith.constant 0 : i32
    return %arg0, %arg1, %c0_i32 : i32, i32, i32
  }
}

</mosaic_0001>

<bundles_post_ra>
// kernel: tpu_custom_call.1
= control target key start
LH: loop header
LB: loop body
LE: loop exit
PB: predicated region body
PF: predicated region fallthrough
CT: control target
= control target key end

     0   :  { %s1553_s0 = inlined_call_operand.hbm [shape: bf16[2,8,32], index: 0, kind: input, shape index: {}]   ;;  %s1554_s1 = inlined_call_operand.hbm [shape: bf16[2,8,32], index: 1, kind: input, shape index: {}]   ;;  %s1555_s2 = inlined_call_operand.hbm [shape: bf16[32,96], index: 2, kind: input, shape index: {}]   ;;  %s1556_s3 = inlined_call_operand.hbm [shape: f32[2,8,32], index: 3, kind: output, shape index: {}]  }
   0x1   :  { %1562 = sst [smem:[#allocation18_spill]] %s1555_s2 }
   0x2   :  { %8 = vsyncpa [#allocation7], 0 }
   0x3   :  { %10 = vsyncpa [#allocation7 + $0x1], 0 }
   0x4   :  { %11 = vsyncpa [#allocation10], 0 }
   0x5   :  { %13 = vsyncpa [#allocation10 + $0x1], 0 }
   0x6   :  { %14 = vsyncpa [#allocation8], 0 }
   0x7   :  { %16 = vsyncpa [#allocation8 + $0x1], 0  ;;  %s1282_s12 = smov 0   ;;  %s1284_s13 = smov 0  }
   0x8   :  { %s1286_s14 = smov 0   ;;  %s1288_s15 = smov 0  }
   0x9   :  { %s1290_s16 = smov 0   ;;  %s1292_s17 = smov 0  }
   0xa LB: > { %s1313_s18 = sadd.s32 4294967295, %s1249_s17   ;;  %s906_s19 = sadd.s32 4294967294, %s1249_s17   ;;  %s1249_s17 = sphi %s1292_s17, %s22_s17   ;;  %s1245_s16 = sphi %s1290_s16, %s1585_s16   ;;  %s1241_s15 = sphi %s1288_s15, %s1584_s15   ;;  %s1237_s14 = sphi %s1286_s14, %s1583_s14   ;;  %s1233_s13 = sphi %s1284_s13, %s1582_s13   ;;  %s1229_s12 = sphi %s1282_s12, %s1581_s12  }
   0xb   : > { %p63_p0 = scmp.ne.s32.totalorder %s1233_s13, %s1229_s12  ;;  %p1557_p1 = scmp.eq.s32.totalorder %s1313_s18, 0 }
   0xc   : > { %p144_p3 = scmp.eq.s32.totalorder %s906_s19, 1  ;;  %p907_p5 = scmp.ge.s32.totalorder %s1249_s17, 1 }
   0xd   : > { %p1322_p4 = por %p1557_p1, %p63_p0  ;;  %p151_p7 = scmp.lt.s32.totalorder %s1249_s17, 3 }
   0xe   : > { %p1327_p6 = por %p144_p3, %p63_p0  ;;  %s1251_s23 = smov [#allocation11]  }
   0xf   : > { %s1563_s20 = scalar_select %p1322_p4, 1, 0 }
  0x10   : > { %s1564_s21 = scalar_select %p1327_p6, 1, 0 }
  0x11   : > { %p1332_p8 = pnand %p907_p5, %p151_p7  ;;  %s163_s24 = sshll.u32 %s1251_s23, 4  ;;  %s164_s24 = int_to_ptr.vmem [resolvable:$true] %s163_s24 }
  0x12   : > { %s41_s26 = sadd.s32 1, %s1245_s16  ;;  %s1567_s2 = sld [smem:[#allocation18_spill]] }
  0x13   : > { %s1565_s22 = scalar_select %p1332_p8, 1, 0 }
  0x14   : > { %p984_p9 = pneg %p1332_p8 }
  0x16   : > { %p1341_p11 = pnand %p984_p9, %p1557_p1 }
  0x18   : > { %s1071_s29 = scalar_lea.hbm %s1567_s2, 256  ;;  %p1073_p13 = pneg %p1341_p11 }
  0x19   : > { %p1072_p12 = scmp.ne.s32.totalorder %s1567_s2, %s1071_s29  ;;  %p1078_p5 = scmp.lt.u32.totalorder %s1071_s29, %s1567_s2 }
  0x1b   : > { %p1074_p0 = pnand %p1073_p13, %p1072_p12 }
  0x1d   : > { %p1075_p3 = pneg %p1074_p0 }
  0x1f   : > { %p1080_p7 = pnand %p1078_p5, %p1075_p3 }
  0x21   : > { %1083 = shalt.err (!%p1080_p7)
}
  0x22   : > { %s1084_s7 = scalar_lea.vmem %s164_s24, 256  ;;  %p1092_p2 = scmp.lt.s32.totalorder %s164_s24, %s164_s24 }
  0x23   : > { %p1085_p9 = scmp.ne.s32.totalorder %s164_s24, %s1084_s7  ;;  %p1093_p6 = scmp.lt.s32.totalorder %s1084_s7, %s1084_s7 }
  0x25   : > { %p1087_p10 = pnand %p1085_p9, %p1073_p13  ;;  %p1094_p4 = por %p1093_p6, %p1092_p2 }
  0x27   : > { %p1088_p1 = pneg %p1087_p10 }
  0x29   : > { %p1095_p8 = pnand %p1094_p4, %p1088_p1 }
  0x2b   : > { %1098 = shalt.err (!%p1095_p8)
}
  0x2c   : > { %s1252_s8 = smov 64   ;;  %s1253_s9 = smov 4  }
  0x2d   : > { %987 = dma.hbm_to_vmem [thread:$0]  (!%p1341_p11), %s1567_s2, 256, %s164_s24, [#allocation10], %s1252_s8, %s1252_s8, %s1253_s9  }
  0x2e   : > { %p43_p1 = scmp.ge.s32.totalorder %s41_s26, 2  ;;  %s50_s19 = sadd.s32 1, %s1237_s14 }
  0x2f   : > { %p57_p2 = scmp.ne.s32.totalorder %s1237_s14, %s1233_s13  ;;  %p58_p4 = scmp.eq.s32.totalorder %s1249_s17, 0 }
  0x30   : > { %s1587_s26 = smov (%p43_p1, %s41_s26), 0  ;;  %p1570_p8 = scmp.eq.s32.totalorder %s1313_s18, 1 }
  0x31   : > { %1568 = sst [smem:[#allocation17_spill]] %s1587_s26  ;;  %p1368_p6 = por %p58_p4, %p57_p2 }
  0x32   : > { %p1374_p10 = por %p1570_p8, %p57_p2  ;;  %s45_s27 = ssub.s32 %s1245_s16, %s1587_s26 }
  0x33   : > { %p1000_p11 = scmp.lt.s32.totalorder %s1249_s17, 2  ;;  %p48_p12 = scmp.eq.s32.totalorder %s45_s27, 0 }
  0x34   : > { %s1571_s25 = scalar_select %p1374_p10, 1, 0 }
  0x35   : > { %s177_s24 = sand.u32 1, %s1237_s14   ;;  %s911_s30 = sshll.u32 %s1245_s16, 6 }
  0x36   : > { %s1382_s28 = sshll.u32 %s177_s24, 2  ;;  %s1391_s6 = scalar_lea.hbm %s1553_s0, %s911_s30 }
  0x37   : > { %s1385_s29 = scalar_select %p48_p12, %s1237_s14, %s50_s19  }
  0x38   : > { %s181_s7 = scalar_lea.vmem [#allocation6], %s1382_s28  ;;  %p1398_p13 = pnand %p1000_p11, %p1368_p6 }
  0x39   : > { %s189_s8 = sshll.u32 %s181_s7, 4  ;;  %s1405_s19 = scalar_lea.hbm %s1554_s1, %s911_s30  ;;  %s1394_s8 = int_to_ptr.vmem [resolvable:$true] %s189_s8 }
  0x3a   : > { %s196_s27 = sand.u32 1, %s1249_s17   ;;  %s178_s4 = scalar_lea.sflag [#allocation7], %s177_s24 }
  0x3b   : > { %s1099_s5 = scalar_lea.hbm %s1391_s6, 64  ;;  %p1101_p3 = pneg %p1398_p13 }
  0x3c   : > { %p1100_p0 = scmp.ne.s32.totalorder %s1391_s6, %s1099_s5  ;;  %s1104_s2 = scalar_lea.hbm %s1553_s0, 128 }
  0x3d   : > { %p1105_p9 = scmp.lt.u32.totalorder %s1391_s6, %s1553_s0  ;;  %p1106_p1 = scmp.lt.u32.totalorder %s1104_s2, %s1099_s5 }
  0x3e   : > { %p1102_p5 = pnand %p1101_p3, %p1100_p0  ;;  %p1108_p4 = scmp.lt.u32.totalorder %s1099_s5, %s1391_s6 }
  0x3f   : > { %p1107_p2 = por %p1106_p1, %p1105_p9 }
  0x40   : > { %p1103_p7 = pneg %p1102_p5 }
  0x41   : > { %p1109_p6 = por %p1108_p4, %p1107_p2 }
  0x43   : > { %p1110_p8 = pnand %p1109_p6, %p1103_p7 }
  0x45   : > { %1113 = shalt.err (!%p1110_p8)
}
  0x46   : > { %s1114_s24 = scalar_lea.vmem %s1394_s8, 64  ;;  %s1254_s30 = smov [#allocation6]  }
  0x47   : > { %p1115_p11 = scmp.ne.s32.totalorder %s1394_s8, %s1114_s24  ;;  %s1119_s11 = sshll.u32 %s1254_s30, 4  ;;  %s1120_s11 = int_to_ptr.vmem [resolvable:$false] %s1119_s11 }
  0x48   : > { %s1121_s26 = scalar_lea.vmem %s1120_s11, 128  ;;  %p1122_p5 = scmp.lt.s32.totalorder %s1394_s8, %s1120_s11 }
  0x49   : > { %p1117_p12 = pnand %p1115_p11, %p1101_p3  ;;  %p1123_p9 = scmp.lt.s32.totalorder %s1121_s26, %s1114_s24 }
  0x4b   : > { %p1118_p0 = pneg %p1117_p12  ;;  %p1124_p1 = por %p1123_p9, %p1122_p5 }
  0x4d   : > { %p1125_p2 = pnand %p1124_p1, %p1118_p0 }
  0x4f   : > { %1128 = shalt.err (!%p1125_p2)
}
  0x50   : > { %991 = dma.hbm_to_vmem [thread:$0]  (!%p1398_p13), %s1391_s6, 64, %s1394_s8, %s178_s4  }
  0x51   : > { %s200_s2 = scalar_lea.vmem [#allocation9], %s1382_s28  ;;  %s197_s23 = scalar_lea.sflag [#allocation10], %s196_s27 }
  0x52   : > { %s208_s5 = sshll.u32 %s200_s2, 4  ;;  %s1129_s7 = scalar_lea.hbm %s1405_s19, 64  ;;  %s209_s5 = int_to_ptr.vmem [resolvable:$true] %s208_s5 }
  0x53   : > { %p1130_p7 = scmp.ne.s32.totalorder %s1405_s19, %s1129_s7  ;;  %s1134_s30 = scalar_lea.hbm %s1554_s1, 128 }
  0x54   : > { %p1135_p8 = scmp.lt.u32.totalorder %s1405_s19, %s1554_s1  ;;  %p1136_p11 = scmp.lt.u32.totalorder %s1134_s30, %s1129_s7 }
  0x55   : > { %p1132_p4 = pnand %p1130_p7, %p1101_p3  ;;  %p1138_p0 = scmp.lt.u32.totalorder %s1129_s7, %s1405_s19 }
  0x56   : > { %p1137_p12 = por %p1136_p11, %p1135_p8 }
  0x57   : > { %p1133_p6 = pneg %p1132_p4 }
  0x58   : > { %p1139_p5 = por %p1138_p0, %p1137_p12 }
  0x5a   : > { %p1140_p9 = pnand %p1139_p5, %p1133_p6 }
  0x5c   : > { %1143 = shalt.err (!%p1140_p9)
}
  0x5d   : > { %s1144_s28 = scalar_lea.vmem %s209_s5, 64  ;;  %s1255_s6 = smov [#allocation9]  }
  0x5e   : > { %p1145_p1 = scmp.ne.s32.totalorder %s209_s5, %s1144_s28  ;;  %s1149_s8 = sshll.u32 %s1255_s6, 4  ;;  %s1150_s8 = int_to_ptr.vmem [resolvable:$false] %s1149_s8 }
  0x5f   : > { %s1151_s27 = scalar_lea.vmem %s1150_s8, 128  ;;  %p1152_p4 = scmp.lt.s32.totalorder %s209_s5, %s1150_s8 }
  0x60   : > { %p1147_p2 = pnand %p1145_p1, %p1101_p3  ;;  %p1153_p10 = scmp.lt.s32.totalorder %s1151_s27, %s1144_s28 }
  0x62   : > { %p1148_p7 = pneg %p1147_p2  ;;  %p1154_p8 = por %p1153_p10, %p1152_p4 }
  0x64   : > { %p1155_p11 = pnand %p1154_p8, %p1148_p7 }
  0x66   : > { %1158 = shalt.err (!%p1155_p11)
}
  0x67   : > { %994 = dma.hbm_to_vmem [thread:$0]  (!%p1398_p13), %s1405_s19, 64, %s209_s5, %s197_s23  }
  0x68   : > { %p1573_p6 = scmp.ne.s32.totalorder %s1565_s22, 0 }
  0x69   : > { %s1458_s4 = sand.u32 (!%p1573_p6), 1, %s1233_s13   ;;  %p1574_p3 = scmp.ne.s32.totalorder (!%p1573_p6), %s1563_s20, 0 }
  0x6a   : > { %217 = sbr.rel (%p1573_p6) target bundleno = 1276 (0x4fc), region = 32  ;;  %s915_s2 = sshll.u32 (!%p1573_p6), %s1458_s4, 2 }
  0x6b   : > { %s220_s7 = scalar_lea.sflag (!%p1573_p6), [#allocation7], %s1458_s4  ;;  %s223_s10 = scalar_lea.vmem (!%p1573_p6), [#allocation6], %s915_s2 }
  0x71   : > { %1212 = dma.done.wait (%p1574_p3), %s220_s7, 64  }
  0x72   : > { %1214 = vsyncadd (%p1574_p3), %s220_s7, 4294967232  ;;  %s228_s9 = sand.u32 1, %s1313_s18   ;;  %s1467_s22 = scalar_lea.vmem [#allocation9], %s915_s2 }
  0x73   : > { %s229_s19 = scalar_lea.sflag [#allocation10], %s228_s9 }
  0x74   : > { %1216 = dma.done.wait (%p1574_p3), %s229_s19, 64  }
  0x75   : > { %1218 = vsyncadd (%p1574_p3), %s229_s19, 4294967232  ;;  %p1575_p10 = scmp.eq.s32.totalorder %s1313_s18, 0 }
  0x77   : > { %1220 = dma.done.wait (%p1575_p10), [#allocation10], 256   ;;  %p1576_p13 = pmov %p1575_p10 }
  0x78   : > { %vm276_vm0 = vcmask 261120   ;;  %v1256_v0 = vmov 0.0   ;;  %vm1257_vm1 = vmmov 0   ;;  %v1061_v1 = vld [vmem:[#allocation11] sm:$0xff]   ;;  %v1062_v2 = vld [vmem:[#allocation11 + $0x8] sm:$0xff]   ;;  %s1258_s20 = smov 96   ;;  %v664_v25 = vlaneseq }
  0x79   : > { %1222 = vsyncadd (%p1576_p13), [#allocation10], 4294967040  ;;  %946 = vmatprep.subr.bf16.mxu0 %v1256_v0  ;;  %954 = vmatprep.subr.bf16.mxu1 %v1256_v0  ;;  %277 = vst.msk [vmem:[#allocation3] sm:$0xff] %vm276_vm0, %v1256_v0  ;;  %v1063_v3 = vld [vmem:[#allocation11] sm:$0xff]   ;;  %v1064_v4 = vld [vmem:[#allocation11 + $0x8] sm:$0xff]   ;;  %vm340_vm2 = vcmask 257024  }
  0x7a   : > { %950 = vmatprep.mubr.msk.bf16.mxu0 %vm1257_vm1, %v1256_v0  ;;  %958 = vmatprep.mubr.msk.bf16.mxu1 %vm1257_vm1, %v1256_v0  ;;  %v278_v5 = vld [vmem:[%s223_s10] sm:$0xf]  ;;  %v551_v8 = vld [vmem:[%s1467_s22] sm:$0xf]  ;;  %vm273_vm3 = vcmask 7168   ;;  %v1259_v22 = vmov -inf  }
  0x7b   : > { %566 = vrot.lane.b32.xlu0 %v1061_v1, %s1258_s20  ;;  %947 = vmatpush3.bf16.msra.mxu0 %v1063_v3  ;;  %274 = vst.msk [vmem:[#allocation4] sm:$0xff] %vm273_vm3, %v1259_v22  ;;  %275 = vst.msk [vmem:[#allocation5] sm:$0xff] %vm273_vm3, %v1256_v0  ;;  %vm713_vm4 = vcmask 1043456   ;;  %v665_v26 = vshrl.u32 %v664_v25, 7  ;;  %v669_v27 = vand.u32 127, %v664_v25  ;;  %vm675_vm6 = vcmask 64512  }
  0x7c   : > { %948 = vmatprep.subr.bf16.mxu0 %v1256_v0  ;;  %v1260_v34 = vmov 0   ;;  %s918_s18 = sshll.u32 %s1458_s4, 3  ;;  %s933_s5 = sshll.u32 %s1241_s15, 7 }
  0x7d   : > { %vm672_vm5 = vcmp.gt.s32.totalorder %v669_v27, %v665_v26  ;;  %1059 = vset.pattern.permute.xlu1 %v1260_v34  ;;  %1060 = vset.pattern.permute.xlu0 %v1260_v34  ;;  %s263_s23 = scalar_lea.vmem [#allocation12], %s918_s18  ;;  %s1503_s26 = scalar_lea.hbm %s1556_s3, %s933_s5 }
  0x7e   : > { %s789_s24 = sshll.u32 %s263_s23, 4  ;;  %s775_s28 = scalar_lea.sflag [#allocation8], %s1458_s4  ;;  %s1505_s24 = int_to_ptr.vmem [resolvable:$true] %s789_s24 }
  0x7f   : > { %568 = vrot.lane.b32.xlu0 %v1062_v2, %s1258_s20  ;;  %949 = vmatpush3.bf16.msra.mxu0 %v1064_v4  ;;  %s1159_s6 = scalar_lea.vmem %s1505_s24, 128  ;;  %p1577_p0 = scmp.ne.s32.totalorder %s1571_s25, 0 }
  0x80   : > { %962 = vmatprep.subr.bf16.mxu0 %v1256_v0  ;;  %v699_v53 = vld [vmem:[#allocation3] sm:$0xff]  ;;  %p1160_p12 = scmp.ne.s32.totalorder %s1505_s24, %s1159_s6  ;;  %s1261_s15 = smov [#allocation12]  }
  0x81   : > { %s1163_s8 = sshll.u32 %s1261_s15, 4  ;;  %s1164_s8 = int_to_ptr.vmem [resolvable:$false] %s1163_s8 }
  0x82   : > { %951 = vmatmul.mubr.msk.bf16.vlgmr.msra.gmra.mrb[0].mxu0 %vm276_vm0, %v278_v5  ;;  %v674_v35 = vld [vmem:[#allocation4] sm:$0xff]  ;;  %v691_v47 = vld [vmem:[#allocation5] sm:$0xff]  ;;  %p1161_p5 = pnand %p1160_p12, %p1577_p0  ;;  %s1165_s27 = scalar_lea.vmem %s1164_s8, 256 }
  0x83   : > { %964 = vmatprep.mubr.msk.bf16.mxu0 %vm1257_vm1, %v1256_v0  ;;  %p1166_p1 = scmp.lt.s32.totalorder %s1505_s24, %s1164_s8  ;;  %p1167_p2 = scmp.lt.s32.totalorder %s1165_s27, %s1159_s6 }
  0x84   : > { %p1162_p9 = pneg %p1161_p5 }
  0x85   : > { %p1168_p7 = por %p1167_p2, %p1166_p1 }
  0x87   : > { %p1169_p4 = pnand %p1168_p7, %p1162_p9 }
  0xed   : > { %v567_v6 = vpop.permute.xlu0 %566 }
  0xee   : > { %955 = vmatpush3.bf16.msra.mxu1 %v567_v6 }
  0xef   : > { %956 = vmatprep.subr.bf16.mxu1 %v1256_v0 }
  0xf1   : > { %v569_v7 = vpop.permute.xlu0 %568 }
  0xf2   : > { %957 = vmatpush3.bf16.msra.mxu1 %v569_v7 }
  0xf3   : > { %968 = vmatprep.subr.bf16.mxu1 %v1256_v0 }
  0xf5   : > { %959 = vmatmul.mubr.msk.bf16.vlgmr.msra.gmra.mrb[0].mxu1 %vm276_vm0, %v551_v8 }
  0xf6   : > { %970 = vmatprep.mubr.msk.bf16.mxu1 %vm1257_vm1, %v1256_v0 }
 0x155   : > { %v332_v9 = vpop.f32.mrb[0].mxu0 }
 0x156   : > { %v338_v10 = vmul.f32 0.17677669, %v332_v9  ;;  %v952_v11 = vpop.f32.mrb[1].mxu0 }
 0x157   : > { %v335_v12 = vpop.f32.mrb[2].mxu0 }
 0x158   : > { %v339_v13 = vpack.c.bf16 %v338_v10, %v338_v10  ;;  %v953_v14 = vpop.f32.mrb[3].mxu0 }
 0x15a   : > { %341 = vst.msk [vmem:[#allocation2] sm:$0xf] %vm340_vm2, %v339_v13 }
 0x161   : > { %v617_v21 = vld [vmem:[#allocation2] sm:$0xf] }
 0x1c8   : > { %v610_v15 = vpop.f32.mrb[0].mxu1 }
 0x1c9   : > { %v616_v16 = vpack.c.bf16 %v610_v15, %v610_v15  ;;  %v960_v17 = vpop.f32.mrb[1].mxu1 }
 0x1ca   : > { %v613_v18 = vpop.f32.mrb[2].mxu1 }
 0x1cb   : > { %v622_v19 = vsel %vm276_vm0, %v616_v16, 0  ;;  %708 = vrot.lane.b32.xlu0 %v616_v16, %s1258_s20  ;;  %v961_v20 = vpop.f32.mrb[3].mxu1 }
 0x1cc   : > { %963 = vmatpush3.bf16.xpose.msra.mxu0 %v622_v19 }
 0x1d3   : > { %965 = vmatmul.mubr.msk.bf16.vlgmr.msra.gmra.mrb[4].mxu0 %vm276_vm0, %v617_v21 }
 0x23d   : > { %v709_v23 = vpop.permute.xlu0 %708 }
 0x23e   : > { %v715_v24 = vsel %vm713_vm4, %v709_v23, 0 }
 0x23f   : > { %969 = vmatpush3.bf16.msra.mxu1 %v715_v24 }
 0x2a6   : > { %v658_v28 = vpop.f32.mrb[4].mxu0 }
 0x2a7   : > { %v673_v29 = vsel %vm672_vm5, -inf, %v658_v28  ;;  %v966_v30 = vpop.f32.mrb[5].mxu0 }
 0x2a8   : > { %v661_v31 = vpop.f32.mrb[6].mxu0  ;;  %v676_v32 = vsel %vm675_vm6, %v673_v29, -inf }
 0x2a9   : > { %677 = vmax.xlane.f32.xlu1 %v676_v32  ;;  %v967_v33 = vpop.f32.mrb[7].mxu0 }
 0x336   : > { %v678_v36 = vpop.xlane.xlu1 %677 }
 0x337   : > { %v679_v37 = vmax.f32 %v674_v35, %v678_v36 }
 0x339   : > { %v680_v38 = vsub.f32 %v674_v35, %v679_v37  ;;  %759 = vst.msk [vmem:[#allocation4] sm:$0xff] %vm273_vm3, %v679_v37  ;;  %685 = vperm.xlu1 %1059, %v679_v37  }
 0x33b   : > { %v681_v39 = vmul.f32 1.442695, %v680_v38 }
 0x33d   : > { %1065 = vpow2.f32 %v681_v39 }
 0x347   : > { %v1066_v40 = vpop.eup %1065 }
 0x348   : > { %702 = vperm.xlu1 %1059, %v1066_v40   ;;  %v692_v48 = vmul.f32 %v1066_v40, %v691_v47 }
 0x3b8   : > { %v686_v41 = vpop.permute.xlu1 %685 }
 0x3b9   : > { %v688_v42 = vsub.f32 %v673_v29, %v686_v41 }
 0x3bb   : > { %v689_v43 = vmul.f32 1.442695, %v688_v42 }
 0x3bd   : > { %1067 = vpow2.f32 %v689_v43 }
 0x3c7   : > { %v1068_v44 = vpop.eup %1067  ;;  %v703_v54 = vpop.permute.xlu1 %702 }
 0x3c8   : > { %v693_v45 = vsel %vm675_vm6, %v1068_v44, 0.0  ;;  %v706_v46 = vpack.c.bf16 %v1068_v44, %v1068_v44  ;;  %v705_v55 = vmul.f32 %v703_v54, %v699_v53 }
 0x3c9   : > { %694 = vadd.xlane.f32.xlu0 %v693_v45 }
 0x3ca   : > { %971 = vmatmul.mubr.msk.bf16.vlgmr.msra.gmra.mrb[4].mxu1 %vm675_vm6, %v706_v46 }
 0x456   : > { %v695_v49 = vpop.xlane.xlu0 %694 }
 0x457   : > { %v696_v50 = vadd.f32 %v695_v49, %v692_v48 }
 0x459   : > { %698 = vst.msk [vmem:[#allocation5] sm:$0xff] %vm273_vm3, %v696_v50 }
 0x460   : > { %v763_v51 = vld [vmem:[#allocation5] sm:$0xff] }
 0x461   : > { %1069 = vrcp.f32 %v763_v51 }
 0x46b   : > { %v1070_v52 = vpop.eup %1069 }
 0x46c   : > { %768 = vperm.xlu1 %1059, %v1070_v52  }
 0x49d   : > { %v751_v56 = vpop.f32.mrb[4].mxu1 }
 0x49e   : > { %v757_v57 = vadd.f32 %v751_v56, %v705_v55  ;;  %v972_v58 = vpop.f32.mrb[5].mxu1 }
 0x49f   : > { %v754_v59 = vpop.f32.mrb[6].mxu1 }
 0x4a0   : > { %758 = vst.msk [vmem:[#allocation3] sm:$0xff] %vm276_vm0, %v757_v57  ;;  %v973_v60 = vpop.f32.mrb[7].mxu1 }
 0x4a7   : > { %v765_v61 = vld [vmem:[#allocation3] sm:$0xff] }
 0x4eb   : > { %v769_v62 = vpop.permute.xlu1 %768 }
 0x4ec   : > { %v771_v63 = vmul.f32 %v769_v62, %v765_v61 }
 0x4ee   : > { %773 = vst.msk [vmem:[%s263_s23] sm:$0xff] %vm276_vm0, %v771_v63 }
 0x4ef   : > { %1172 = shalt.err (!%p1169_p4)
}
 0x4f0   : > { %s1173_s4 = scalar_lea.hbm %s1503_s26, 128  ;;  %s1177_s10 = scalar_lea.hbm %s1556_s3, 256 }
 0x4f1   : > { %p1174_p8 = scmp.ne.s32.totalorder %s1503_s26, %s1173_s4  ;;  %p1178_p3 = scmp.lt.u32.totalorder %s1503_s26, %s1556_s3 }
 0x4f2   : > { %p1179_p10 = scmp.lt.u32.totalorder %s1177_s10, %s1173_s4  ;;  %p1181_p12 = scmp.lt.u32.totalorder %s1173_s4, %s1503_s26 }
 0x4f3   : > { %p1175_p11 = pnand %p1174_p8, %p1577_p0 }
 0x4f4   : > { %p1180_p13 = por %p1179_p10, %p1178_p3 }
 0x4f5   : > { %p1176_p6 = pneg %p1175_p11 }
 0x4f6   : > { %p1182_p5 = por %p1181_p12, %p1180_p13 }
 0x4f8   : > { %p1183_p9 = pnand %p1182_p5, %p1176_p6 }
 0x4fa   : > { %1186 = shalt.err (!%p1183_p9)
}
 0x4fb   : > { %982 = dma.vmem_to_hbm [thread:$0]  (%p1577_p0), %s1505_s24, 128, %s1503_s26, %s775_s28  }
 0x4fc PF: > { %s801_s22 = sand.u32 1, %s1229_s12   ;;  %p1578_p1 = scmp.ne.s32.totalorder %s1564_s21, 0 }
 0x4fd   : > { %p1579_p2 = scmp.ge.s32.totalorder %s1249_s17, 2  ;;  %s802_s20 = scalar_lea.sflag [#allocation8], %s801_s22 }
 0x4ff   : > { %p996_p7 = pnand %p1579_p2, %p1578_p1 }
 0x501   : > { %1224 = dma.done.wait (!%p996_p7), %s802_s20, 128  }
 0x502   : > { %1226 = vsyncadd (!%p996_p7), %s802_s20, 4294967168  ;;  %s22_s17 = sadd.s32 1, %s1249_s17   ;;  %s1580_s25 = sld [smem:[#allocation17_spill]] }
 0x503   : > { %p19_p4 = scmp.ge.s32.totalorder %s22_s17, 4   ;;  %s1581_s12 = smov %s1233_s13 }
 0x504   : > { %s1582_s13 = smov %s1237_s14  ;;  %s1583_s14 = smov %s1385_s29 }
 0x505   : > { %s1584_s15 = smov %s1245_s16  ;;  %21 = sbr.rel (!%p19_p4) target bundleno = 10 (0xa), region = 110 }
 0x508   : > { %s1585_s16 = smov %s1580_s25 }
 0x50c   :  { %807 = vsyncpa [#allocation7], 1 }
 0x50d   :  { %809 = vsyncpa [#allocation7 + $0x1], 1 }
 0x50e   :  { %810 = vsyncpa [#allocation10], 1 }
 0x50f   :  { %812 = vsyncpa [#allocation10 + $0x1], 1 }
 0x510   :  { %813 = vsyncpa [#allocation8], 1 }
 0x511   :  { %815 = vsyncpa [#allocation8 + $0x1], 1 }

</bundles_post_ra>
